<compile_context>
chip_gen: v6e
topology: v6e:2x2x1
jax: 0.10.0
libtpu: 0.0.40
codegen_flags: <defaults>
</compile_context>

<pallas_src>
import jax
import jax.numpy as jnp
from jax.experimental import pallas as pl
from jax.experimental.pallas import tpu as pltpu


def make_wgan_f_kernel(true_b, noise, feat, d):
    inv_bd = 1.0 / float(true_b * d)      # scale for residual MSE
    inv_bf = 1.0 / float(true_b * feat)   # scale for inter (feature) MSE

    def kernel(x_ref, w_cat_ref, w_gen_ref, w_d1_ref, b_d1_ref, out_ref):
        # x: (B_pad, D) zero-padded flattened state images
        x = x_ref[...]

        # Fused matmul: x @ [w_enc | w_d1]  -> (B_pad, noise + feat)
        #   first `noise` lanes = encoder output z
        #   last  `feat`  lanes = discriminator real-feature pre-activation
        cat = jnp.dot(x, w_cat_ref[...], preferred_element_type=jnp.float32)
        z = cat[:, :noise]                              # (B_pad, noise)
        b1 = b_d1_ref[...]                              # (1, feat)
        h_real = cat[:, noise:] + b1                    # (B_pad, feat)

        # generator: tanh(z @ w_gen) -> decoded images (B_pad, D)
        dec = jnp.tanh(jnp.dot(z, w_gen_ref[...],
                               preferred_element_type=jnp.float32))

        # discriminator fake features
        h_fake = jnp.dot(dec, w_d1_ref[...],
                         preferred_element_type=jnp.float32) + b1

        # leaky-relu (slope 0.2) hidden features
        h_real = jnp.where(h_real > 0, h_real, 0.2 * h_real)
        h_fake = jnp.where(h_fake > 0, h_fake, 0.2 * h_fake)

        # residual_loss = mean((x - dec)^2) over the true B*D elements
        diff = x - dec
        # inter_loss = mean((h_real - h_fake)^2) over the true B*feat elements
        fdiff = h_real - h_fake

        # merged reduction: lane-axis sums, pre-scaled, one final sublane reduce
        row = (jnp.sum(diff * diff, axis=-1, keepdims=True) * inv_bd
               + jnp.sum(fdiff * fdiff, axis=-1, keepdims=True) * inv_bf)
        out_ref[0, 0] = jnp.sum(row)

    return kernel


def wgan_f_forward(x_img, w_enc, w_gen, w_d1, b_d1):
    """x_img: (B, H, W) float32 state batch (matches `state` before unsqueeze)."""
    B, H, W = x_img.shape
    D = H * W
    NOISE = w_enc.shape[1]
    FEAT = w_d1.shape[1]

    x = x_img.reshape(B, D).astype(jnp.float32)          # NCHW, C=1, flattened

    # pad batch to the 8-row f32 sublane quantum; zero rows contribute 0 to
    # both squared-error sums, so no masking is needed in the kernel.
    B_pad = max(8, ((B + 7) // 8) * 8)
    x_pad = jnp.zeros((B_pad, D), jnp.float32).at[:B].set(x)

    # concat encoder + discriminator-layer-1 weights -> one MXU pass over x
    w_cat = jnp.concatenate([w_enc, w_d1], axis=1)        # (D, NOISE + FEAT)

    kernel = make_wgan_f_kernel(B, NOISE, FEAT, D)

    out = pl.pallas_call(
        kernel,
        out_shape=jax.ShapeDtypeStruct((1, 1), jnp.float32),
        in_specs=[
            pl.BlockSpec(memory_space=pltpu.MemorySpace.VMEM),  # x_pad
            pl.BlockSpec(memory_space=pltpu.MemorySpace.VMEM),  # w_cat
            pl.BlockSpec(memory_space=pltpu.MemorySpace.VMEM),  # w_gen
            pl.BlockSpec(memory_space=pltpu.MemorySpace.VMEM),  # w_d1
            pl.BlockSpec(memory_space=pltpu.MemorySpace.VMEM),  # b_d1
        ],
        out_specs=pl.BlockSpec(memory_space=pltpu.MemorySpace.SMEM),
    )(x_pad, w_cat, w_gen, w_d1, b_d1)
    return out[0, 0]


def _reference(x_img, w_enc, w_gen, w_d1, b_d1):
    B, H, W = x_img.shape
    x = x_img.reshape(B, H * W).astype(jnp.float32)
    z = x @ w_enc
    dec = jnp.tanh(z @ w_gen)
    mse = jnp.mean((x - dec) ** 2)
    hr = x @ w_d1 + b_d1
    hr = jnp.where(hr > 0, hr, 0.2 * hr)
    hf = dec @ w_d1 + b_d1
    hf = jnp.where(hf > 0, hf, 0.2 * hf)
    inter = jnp.mean((hr - hf) ** 2)
    return mse + inter


if __name__ == "__main__":
    # small shapes consistent with the module: batch=2, 16x16 single-channel
    # state images, noise_size=8, discriminator feature width=32
    B, H, W = 2, 16, 16
    D = H * W
    NOISE = 8
    FEAT = 32

    key = jax.random.PRNGKey(0)
    k_x, k_e, k_g, k_d1, k_b1 = jax.random.split(key, 5)

    x_img = jax.random.normal(k_x, (B, H, W), dtype=jnp.float32)
    w_enc = jax.random.normal(k_e, (D, NOISE), dtype=jnp.float32) * 0.05
    w_gen = jax.random.normal(k_g, (NOISE, D), dtype=jnp.float32) * 0.05
    w_d1 = jax.random.normal(k_d1, (D, FEAT), dtype=jnp.float32) * 0.05
    b_d1 = jax.random.normal(k_b1, (1, FEAT), dtype=jnp.float32) * 0.01

    enc_loss = wgan_f_forward(x_img, w_enc, w_gen, w_d1, b_d1)
    jax.block_until_ready(enc_loss)

    ref = _reference(x_img, w_enc, w_gen, w_d1, b_d1)
    assert jnp.allclose(enc_loss, ref, rtol=1e-5, atol=1e-5), (enc_loss, ref)

    print("KERNEL_OK")
</pallas_src>

<mosaic_0001>
module attributes {stable_mosaic.version = 11 : i64} {
  func.func @kernel(%arg0: memref<8x256xf32, #tpu.memory_space<vmem>>, %arg1: memref<256x40xf32, #tpu.memory_space<vmem>>, %arg2: memref<8x256xf32, #tpu.memory_space<vmem>>, %arg3: memref<256x32xf32, #tpu.memory_space<vmem>>, %arg4: memref<1x32xf32, #tpu.memory_space<vmem>>, %arg5: memref<1x1xf32, #tpu.memory_space<smem>>) attributes {dimension_semantics = [], scalar_prefetch = 0 : i64, scratch_operands = 0 : i64, tpu.core_type = #tpu.core_type<tc>} {
    %c0 = arith.constant 0 : index
    %c0_0 = arith.constant 0 : index
    %0 = vector.load %arg0[%c0, %c0_0] : memref<8x256xf32, #tpu.memory_space<vmem>>, vector<8x256xf32>
    %c0_1 = arith.constant 0 : index
    %c0_2 = arith.constant 0 : index
    %1 = vector.load %arg1[%c0_1, %c0_2] : memref<256x40xf32, #tpu.memory_space<vmem>>, vector<256x40xf32>
    %cst = arith.constant dense<0.000000e+00> : vector<8x40xf32>
    %2 = tpu.matmul %0, %1, %cst {dimension_numbers = #tpu.dot_dimension_numbers<[1], [0], [0], [1], [0, 0, 1, 1], [], []>} : vector<8x256xf32>, vector<256x40xf32>, vector<8x40xf32> -> vector<8x40xf32>
    %3 = vector.extract_strided_slice %2 {offsets = [0, 0], sizes = [8, 8], strides = [1, 1]} : vector<8x40xf32> to vector<8x8xf32>
    %c0_3 = arith.constant 0 : index
    %c0_4 = arith.constant 0 : index
    %4 = vector.load %arg4[%c0_3, %c0_4] : memref<1x32xf32, #tpu.memory_space<vmem>>, vector<1x32xf32>
    %5 = vector.extract_strided_slice %2 {offsets = [0, 8], sizes = [8, 32], strides = [1, 1]} : vector<8x40xf32> to vector<8x32xf32>
    %6 = vector.broadcast %4 : vector<1x32xf32> to vector<8x32xf32>
    %7 = arith.addf %5, %6 : vector<8x32xf32>
    %c0_5 = arith.constant 0 : index
    %c0_6 = arith.constant 0 : index
    %8 = vector.load %arg2[%c0_5, %c0_6] : memref<8x256xf32, #tpu.memory_space<vmem>>, vector<8x256xf32>
    %cst_7 = arith.constant dense<0.000000e+00> : vector<8x256xf32>
    %9 = tpu.matmul %3, %8, %cst_7 {dimension_numbers = #tpu.dot_dimension_numbers<[1], [0], [0], [1], [0, 0, 1, 1], [], []>} : vector<8x8xf32>, vector<8x256xf32>, vector<8x256xf32> -> vector<8x256xf32>
    %10 = math.tanh %9 : vector<8x256xf32>
    %c0_8 = arith.constant 0 : index
    %c0_9 = arith.constant 0 : index
    %11 = vector.load %arg3[%c0_8, %c0_9] : memref<256x32xf32, #tpu.memory_space<vmem>>, vector<256x32xf32>
    %cst_10 = arith.constant dense<0.000000e+00> : vector<8x32xf32>
    %12 = tpu.matmul %10, %11, %cst_10 {dimension_numbers = #tpu.dot_dimension_numbers<[1], [0], [0], [1], [0, 0, 1, 1], [], []>} : vector<8x256xf32>, vector<256x32xf32>, vector<8x32xf32> -> vector<8x32xf32>
    %13 = vector.broadcast %4 : vector<1x32xf32> to vector<8x32xf32>
    %14 = arith.addf %12, %13 : vector<8x32xf32>
    %cst_11 = arith.constant 0.000000e+00 : f32
    %15 = vector.broadcast %cst_11 : f32 to vector<8x32xf32>
    %16 = arith.cmpf ogt, %7, %15 : vector<8x32xf32>
    %cst_12 = arith.constant 2.000000e-01 : f32
    %17 = vector.broadcast %cst_12 : f32 to vector<8x32xf32>
    %18 = arith.mulf %17, %7 : vector<8x32xf32>
    %19 = arith.select %16, %7, %18 : vector<8x32xi1>, vector<8x32xf32>
    %cst_13 = arith.constant 0.000000e+00 : f32
    %20 = vector.broadcast %cst_13 : f32 to vector<8x32xf32>
    %21 = arith.cmpf ogt, %14, %20 : vector<8x32xf32>
    %cst_14 = arith.constant 2.000000e-01 : f32
    %22 = vector.broadcast %cst_14 : f32 to vector<8x32xf32>
    %23 = arith.mulf %22, %14 : vector<8x32xf32>
    %24 = arith.select %21, %14, %23 : vector<8x32xi1>, vector<8x32xf32>
    %25 = arith.subf %0, %10 : vector<8x256xf32>
    %26 = arith.subf %19, %24 : vector<8x32xf32>
    %27 = arith.mulf %25, %25 : vector<8x256xf32>
    %cst_15 = arith.constant dense<0.000000e+00> : vector<8xf32>
    %28 = vector.multi_reduction <add>, %27, %cst_15 [1] : vector<8x256xf32> to vector<8xf32>
    %29 = vector.shape_cast %28 : vector<8xf32> to vector<8x1xf32>
    %cst_16 = arith.constant 0.001953125 : f32
    %30 = vector.broadcast %cst_16 : f32 to vector<8x1xf32>
    %31 = arith.mulf %29, %30 : vector<8x1xf32>
    %32 = arith.mulf %26, %26 : vector<8x32xf32>
    %cst_17 = arith.constant dense<0.000000e+00> : vector<8xf32>
    %33 = vector.multi_reduction <add>, %32, %cst_17 [1] : vector<8x32xf32> to vector<8xf32>
    %34 = vector.shape_cast %33 : vector<8xf32> to vector<8x1xf32>
    %cst_18 = arith.constant 1.562500e-02 : f32
    %35 = vector.broadcast %cst_18 : f32 to vector<8x1xf32>
    %36 = arith.mulf %34, %35 : vector<8x1xf32>
    %37 = arith.addf %31, %36 : vector<8x1xf32>
    %38 = vector.shape_cast %37 : vector<8x1xf32> to vector<1x8x1xf32>
    %cst_19 = arith.constant dense<0.000000e+00> : vector<1xf32>
    %39 = vector.multi_reduction <add>, %38, %cst_19 [1, 2] : vector<1x8x1xf32> to vector<1xf32>
    %40 = vector.shape_cast %39 : vector<1xf32> to vector<1x1x1xf32>
    %41 = vector.extract %40[0, 0, 0] : f32 from vector<1x1x1xf32>
    %c0_20 = arith.constant 0 : index
    %c0_21 = arith.constant 0 : index
    %42 = memref.load %arg5[%c0_20, %c0_21] : memref<1x1xf32, #tpu.memory_space<smem>>
    memref.store %41, %arg5[%c0_20, %c0_21] : memref<1x1xf32, #tpu.memory_space<smem>>
    return
  }
}

</mosaic_0001>

<bundles_post_ra>
// kernel: tpu_custom_call.1
= control target key start
LH: loop header
LB: loop body
LE: loop exit
PB: predicated region body
PF: predicated region fallthrough
CT: control target
= control target key end

     0   :  { %s727_s0 = inlined_call_operand.vmem [shape: f32[8,256], index: 0, kind: input, shape index: {}]   ;;  %s728_s1 = inlined_call_operand.vmem [shape: f32[256,40], index: 1, kind: input, shape index: {}]   ;;  %s729_s2 = inlined_call_operand.vmem [shape: f32[8,256], index: 2, kind: input, shape index: {}]   ;;  %s730_s3 = inlined_call_operand.vmem [shape: f32[256,32], index: 3, kind: input, shape index: {}]   ;;  %s731_s4 = inlined_call_operand.vmem [shape: f32[1,32], index: 4, kind: input, shape index: {}]   ;;  %s732_s5 = inlined_call_operand.hbm [shape: f32[1,1], index: 5, kind: output, shape index: {}]  }
   0x1   :  { %v54_v0 = vld [vmem:[%s728_s1 + $0xf8] sm:$0xff]  ;;  %v53_v2 = vld [vmem:[%s728_s1 + $0xf0] sm:$0xff]  ;;  %v52_v4 = vld [vmem:[%s728_s1 + $0xe8] sm:$0xff] }
   0x2   :  { %v38_v1 = vld [vmem:[%s728_s1 + $0x78] sm:$0xff]  ;;  %375 = vmatprep.subr.mxu0 %v54_v0  ;;  %v37_v3 = vld [vmem:[%s728_s1 + $0x70] sm:$0xff]  ;;  %v36_v5 = vld [vmem:[%s728_s1 + $0x68] sm:$0xff] }
   0x3   :  { %376 = vmatpush3.msra.mxu0 %v38_v1  ;;  %v51_v6 = vld [vmem:[%s728_s1 + $0xe0] sm:$0xff]  ;;  %v50_v8 = vld [vmem:[%s728_s1 + $0xd8] sm:$0xff]  ;;  %v49_v10 = vld [vmem:[%s728_s1 + $0xd0] sm:$0xff] }
   0x4   :  { %377 = vmatprep.subr.mxu0 %v53_v2  ;;  %v35_v7 = vld [vmem:[%s728_s1 + $0x60] sm:$0xff]  ;;  %v34_v9 = vld [vmem:[%s728_s1 + $0x58] sm:$0xff]  ;;  %v33_v11 = vld [vmem:[%s728_s1 + $0x50] sm:$0xff] }
   0x5   :  { %378 = vmatpush3.msra.mxu0 %v37_v3  ;;  %v48_v12 = vld [vmem:[%s728_s1 + $0xc8] sm:$0xff]  ;;  %v550_v15 = vld [vmem:[%s731_s4] ss:$0 sm:$0xff] }
   0x6   :  { %379 = vmatprep.subr.mxu0 %v52_v4  ;;  %v541_v13 = vld [vmem:[%s727_s0 + $0x8] sm:$0xff] }
   0x7   :  { %380 = vmatpush3.msra.mxu0 %v36_v5  ;;  %v32_v14 = vld [vmem:[%s728_s1 + $0x48] sm:$0xff]  ;;  %119 = vmatprep.mubr.f32.mxu0 %v541_v13 }
   0x8   :  { %381 = vmatprep.subr.mxu0 %v51_v6 }
   0x9   :  { %382 = vmatpush3.msra.mxu0 %v35_v7 }
   0xa   :  { %383 = vmatprep.subr.mxu0 %v50_v8 }
   0xb   :  { %384 = vmatpush3.msra.mxu0 %v34_v9 }
   0xc   :  { %385 = vmatprep.subr.mxu0 %v49_v10 }
   0xd   :  { %10 = vsyncpa [#allocation3], 0  ;;  %386 = vmatpush3.msra.mxu0 %v33_v11  ;;  %v47_v16 = vld [vmem:[%s728_s1 + $0xc0] sm:$0xff]  ;;  %s465_s27 = smov 8   ;;  %v46_v18 = vld [vmem:[%s728_s1 + $0xb8] sm:$0xff]  ;;  %v466_v37 = vmov 0.0  }
   0xe   :  { %132 = vrot.lane.b32.xlu0 %v550_v15, %s465_s27  ;;  %387 = vmatprep.subr.mxu0 %v48_v12  ;;  %v31_v17 = vld [vmem:[%s728_s1 + $0x40] sm:$0xff]  ;;  %v30_v19 = vld [vmem:[%s728_s1 + $0x38] sm:$0xff]  ;;  %v45_v20 = vld [vmem:[%s728_s1 + $0xb0] sm:$0xff]  ;;  %vm138_vm0 = vcmask 64512   ;;  %vm341_vm3 = vcmask 261120   ;;  %vm347_vm4 = vcmask 7168  }
   0xf   :  { %388 = vmatpush3.msra.mxu0 %v32_v14  ;;  %v29_v21 = vld [vmem:[%s728_s1 + $0x30] sm:$0xff]  ;;  %v44_v22 = vld [vmem:[%s728_s1 + $0xa8] sm:$0xff]  ;;  %v43_v24 = vld [vmem:[%s728_s1 + $0xa0] sm:$0xff]  ;;  %206 = vmatprep.mubr.f32.mxu1 %v466_v37  ;;  %s468_s22 = smov [#allocation2]  }
  0x10   :  { %389 = vmatprep.subr.mxu0 %v47_v16  ;;  %v28_v23 = vld [vmem:[%s728_s1 + $0x28] sm:$0xff]  ;;  %v27_v25 = vld [vmem:[%s728_s1 + $0x20] sm:$0xff]  ;;  %v42_v26 = vld [vmem:[%s728_s1 + $0x98] sm:$0xff] }
  0x11   :  { %390 = vmatpush3.msra.mxu0 %v31_v17  ;;  %v26_v27 = vld [vmem:[%s728_s1 + $0x18] sm:$0xff]  ;;  %v41_v28 = vld [vmem:[%s728_s1 + $0x90] sm:$0xff]  ;;  %v40_v30 = vld [vmem:[%s728_s1 + $0x88] sm:$0xff] }
  0x12   :  { %391 = vmatprep.subr.mxu0 %v46_v18  ;;  %v25_v29 = vld [vmem:[%s728_s1 + $0x10] sm:$0xff]  ;;  %v24_v31 = vld [vmem:[%s728_s1 + $0x8] sm:$0xff]  ;;  %v39_v32 = vld [vmem:[%s728_s1 + $0x80] sm:$0xff] }
  0x13   :  { %392 = vmatpush3.msra.mxu0 %v30_v19  ;;  %v23_v33 = vld [vmem:[%s728_s1] sm:$0xff]  ;;  %v137_v35 = vld [vmem:[%s729_s2 + $0x8] sm:$0xff]  ;;  %v246_v38 = vld [vmem:[%s730_s3 + $0xf8] sm:$0xff] }
  0x14   :  { %393 = vmatprep.subr.mxu0 %v45_v20  ;;  %v611_v34 = vld [vmem:[%s727_s0] sm:$0xff]  ;;  %172 = vmatprep.subr.mxu1 %v137_v35  ;;  %v230_v42 = vld [vmem:[%s730_s3 + $0x78] sm:$0xff]  ;;  %v245_v43 = vld [vmem:[%s730_s3 + $0xf0] sm:$0xff] }
  0x15   :  { %394 = vmatpush3.msra.mxu0 %v29_v21  ;;  %v136_v36 = vld [vmem:[%s729_s2] sm:$0xff]  ;;  %v229_v44 = vld [vmem:[%s730_s3 + $0x70] sm:$0xff]  ;;  %v244_v45 = vld [vmem:[%s730_s3 + $0xe8] sm:$0xff] }
  0x16   :  { %395 = vmatprep.subr.mxu0 %v44_v22  ;;  %173 = vmatpush1.msra.mxu1 %v136_v36  ;;  %v228_v46 = vld [vmem:[%s730_s3 + $0x68] sm:$0xff]  ;;  %v243_v47 = vld [vmem:[%s730_s3 + $0xe0] sm:$0xff]  ;;  %v242_v49 = vld [vmem:[%s730_s3 + $0xd8] sm:$0xff] }
  0x17   :  { %396 = vmatpush3.msra.mxu0 %v28_v23  ;;  %410 = vmatprep.subr.mxu1 %v246_v38  ;;  %v227_v48 = vld [vmem:[%s730_s3 + $0x60] sm:$0xff]  ;;  %v226_v50 = vld [vmem:[%s730_s3 + $0x58] sm:$0xff]  ;;  %v241_v51 = vld [vmem:[%s730_s3 + $0xd0] sm:$0xff] }
  0x18   :  { %397 = vmatprep.subr.mxu0 %v43_v24  ;;  %v225_v52 = vld [vmem:[%s730_s3 + $0x50] sm:$0xff]  ;;  %v240_v53 = vld [vmem:[%s730_s3 + $0xc8] sm:$0xff]  ;;  %v239_v55 = vld [vmem:[%s730_s3 + $0xc0] sm:$0xff] }
  0x19   :  { %398 = vmatpush3.msra.mxu0 %v27_v25  ;;  %v224_v54 = vld [vmem:[%s730_s3 + $0x48] sm:$0xff]  ;;  %v223_v56 = vld [vmem:[%s730_s3 + $0x40] sm:$0xff]  ;;  %v238_v57 = vld [vmem:[%s730_s3 + $0xb8] sm:$0xff] }
  0x1a   :  { %399 = vmatprep.subr.mxu0 %v42_v26  ;;  %v222_v58 = vld [vmem:[%s730_s3 + $0x38] sm:$0xff]  ;;  %v237_v59 = vld [vmem:[%s730_s3 + $0xb0] sm:$0xff]  ;;  %v236_v61 = vld [vmem:[%s730_s3 + $0xa8] sm:$0xff] }
  0x1b   :  { %400 = vmatpush3.msra.mxu0 %v26_v27  ;;  %v221_v60 = vld [vmem:[%s730_s3 + $0x30] sm:$0xff]  ;;  %v220_v62 = vld [vmem:[%s730_s3 + $0x28] sm:$0xff]  ;;  %v235_v63 = vld [vmem:[%s730_s3 + $0xa0] sm:$0xff] }
  0x1c   :  { %401 = vmatprep.subr.mxu0 %v41_v28  ;;  %v219_v0 = vld [vmem:[%s730_s3 + $0x20] sm:$0xff]  ;;  %v234_v1 = vld [vmem:[%s730_s3 + $0x98] sm:$0xff]  ;;  %v233_v3 = vld [vmem:[%s730_s3 + $0x90] sm:$0xff] }
  0x1d   :  { %402 = vmatpush3.msra.mxu0 %v25_v29  ;;  %v218_v2 = vld [vmem:[%s730_s3 + $0x18] sm:$0xff]  ;;  %v217_v4 = vld [vmem:[%s730_s3 + $0x10] sm:$0xff]  ;;  %v232_v5 = vld [vmem:[%s730_s3 + $0x88] sm:$0xff] }
  0x1e   :  { %403 = vmatprep.subr.mxu0 %v40_v30  ;;  %v216_v6 = vld [vmem:[%s730_s3 + $0x8] sm:$0xff]  ;;  %v231_v7 = vld [vmem:[%s730_s3 + $0x80] sm:$0xff] }
  0x1f   :  { %404 = vmatpush3.msra.mxu0 %v24_v31  ;;  %v215_v8 = vld [vmem:[%s730_s3] sm:$0xff]  ;;  %s467_s3 = smov 120  }
  0x20   :  { %405 = vmatprep.subr.mxu0 %v39_v32 }
  0x21   :  { %406 = vmatpush3.msra.mxu0 %v23_v33 }
  0x22   :  { %120 = vmatmul.mubr.f32.vlgmr.msra.gmra.mxu0 %v611_v34 }
  0x80   :  { %v133_v26 = vpop.permute.xlu0 %132 }
  0xe2   :  { %v407_v39 = vpop.f32.mrf.mxu0 }
  0xe4   :  { %v408_v40 = vpop.f32.mrf.mxu0 }
  0xe5   :  { %v623_v41 = vadd.f32 %v408_v40, %v407_v39 }
  0xe7   :  { %374 = vmatmul.mubr.msk.f32.vlgmr.msra.gmra.mxu1 %vm138_vm0, %v623_v41  ;;  %v135_v27 = vadd.f32 %v623_v41, %v133_v26 }
  0xe8   :  { %411 = vmatpush3.msra.mxu1 %v230_v42 }
  0xe9   :  { %412 = vmatprep.subr.mxu1 %v245_v43  ;;  %v318_v28 = vmul.f32 0.2, %v135_v27  ;;  %vm317_vm2 = vcmp.gt.f32.partialorder %v135_v27, 0.0 }
  0xea   :  { %413 = vmatpush3.msra.mxu1 %v229_v44 }
  0xeb   :  { %414 = vmatprep.subr.mxu1 %v244_v45  ;;  %v319_v29 = vsel %vm317_vm2, %v135_v27, %v318_v28 }
  0xec   :  { %415 = vmatpush3.msra.mxu1 %v228_v46 }
  0xed   :  { %416 = vmatprep.subr.mxu1 %v243_v47 }
  0xee   :  { %417 = vmatpush3.msra.mxu1 %v227_v48 }
  0xef   :  { %418 = vmatprep.subr.mxu1 %v242_v49 }
  0xf0   :  { %419 = vmatpush3.msra.mxu1 %v226_v50 }
  0xf1   :  { %420 = vmatprep.subr.mxu1 %v241_v51 }
  0xf2   :  { %421 = vmatpush3.msra.mxu1 %v225_v52 }
  0xf3   :  { %422 = vmatprep.subr.mxu1 %v240_v53 }
  0xf4   :  { %423 = vmatpush3.msra.mxu1 %v224_v54 }
  0xf5   :  { %424 = vmatprep.subr.mxu1 %v239_v55 }
  0xf6   :  { %425 = vmatpush3.msra.mxu1 %v223_v56 }
  0xf7   :  { %426 = vmatprep.subr.mxu1 %v238_v57 }
  0xf8   :  { %427 = vmatpush3.msra.mxu1 %v222_v58 }
  0xf9   :  { %428 = vmatprep.subr.mxu1 %v237_v59 }
  0xfa   :  { %429 = vmatpush3.msra.mxu1 %v221_v60 }
  0xfb   :  { %430 = vmatprep.subr.mxu1 %v236_v61 }
  0xfc   :  { %431 = vmatpush3.msra.mxu1 %v220_v62 }
  0xfd   :  { %432 = vmatprep.subr.mxu1 %v235_v63 }
  0xfe   :  { %433 = vmatpush3.msra.mxu1 %v219_v0 }
  0xff   :  { %434 = vmatprep.subr.mxu1 %v234_v1 }
 0x100   :  { %435 = vmatpush3.msra.mxu1 %v218_v2 }
 0x101   :  { %436 = vmatprep.subr.mxu1 %v233_v3 }
 0x102   :  { %437 = vmatpush3.msra.mxu1 %v217_v4 }
 0x103   :  { %438 = vmatprep.subr.mxu1 %v232_v5 }
 0x104   :  { %439 = vmatpush3.msra.mxu1 %v216_v6 }
 0x105   :  { %440 = vmatprep.subr.mxu1 %v231_v7 }
 0x106   :  { %441 = vmatpush3.msra.mxu1 %v215_v8 }
 0x1a7   :  { %v208_v9 = vpop.f32.mrf.mxu1 }
 0x1a8   :  { %451 = vtanh.f32 %v208_v9 }
 0x1a9   :  { %v210_v10 = vpop.f32.mrf.mxu1 }
 0x1aa   :  { %453 = vtanh.f32 %v210_v10 }
 0x1b5   :  { %v452_v11 = vpop.eup %451 }
 0x1b6   :  { %v323_v12 = vsub.f32 %v611_v34, %v452_v11 }
 0x1b7   :  { %v454_v14 = vpop.eup %453 }
 0x1b8   :  { %311 = vmatprep.mubr.f32.mxu1 %v454_v14  ;;  %v324_v16 = vsub.f32 %v541_v13, %v454_v14  ;;  %v330_v17 = vmul.f32 %v323_v12, %v323_v12 }
 0x1b9   :  { %312 = vmatmul.mubr.f32.vlgmr.msra.gmra.mxu1 %v452_v11 }
 0x1ba   :  { %v331_v18 = vmul.f32 %v324_v16, %v324_v16 }
 0x1bc   :  { %v332_v19 = vadd.f32 %v331_v18, %v330_v17 }
 0x279   :  { %v442_v20 = vpop.f32.mrf.mxu1 }
 0x27b   :  { %v443_v21 = vpop.f32.mrf.mxu1 }
 0x27c   :  { %v444_v22 = vadd.f32 %v443_v21, %v442_v20 }
 0x27e   :  { %v314_v23 = vadd.f32 %v444_v22, %v550_v15 }
 0x280   :  { %vm320_vm1 = vcmp.gt.f32.partialorder %v314_v23, 0.0  ;;  %v321_v24 = vmul.f32 0.2, %v314_v23 }
 0x282   :  { %v322_v25 = vsel %vm320_vm1, %v314_v23, %v321_v24 }
 0x283   :  { %326 = vrot.lane.b32.xlu0 %v322_v25, %s465_s27 }
 0x2f5   :  { %v327_v13 = vpop.permute.xlu0 %326 }
 0x2f6   :  { %v329_v30 = vsub.f32 %v319_v29, %v327_v13 }
 0x2f8   :  { %v336_v31 = vmul.f32 %v329_v30, %v329_v30 }
 0x2fa   :  { %338 = vrot.lane.b32.xlu1 %v336_v31, %s467_s3 }
 0x31e   :  { %333 = vadd.xlane.f32.xlu1 %v332_v19 }
 0x36c   :  { %v339_v32 = vpop.permute.xlu1 %338 }
 0x36d   :  { %v342_v15 = vsel %vm341_vm3, %v339_v32, 0.0 }
 0x36e   :  { %343 = vadd.xlane.f32.xlu0 %v342_v15 }
 0x3a7   :  { %v334_v33 = vpop.xlane.xlu1 %333 }
 0x3a8   :  { %v335_v35 = vmul.f32 0.001953125, %v334_v33 }
 0x3f7   :  { %v344_v34 = vpop.xlane.xlu0 %343 }
 0x3f8   :  { %v345_v36 = vmul.f32 0.015625, %v344_v34 }
 0x3fa   :  { %v346_v37 = vadd.f32 %v345_v36, %v335_v35 }
 0x3fc   :  { %v348_v38 = vsel %vm347_vm4, %v346_v37, 0.0 }
 0x3fd   :  { %349 = vadd.xlane.f32.xlu0 %v348_v38 }
 0x486   :  { %v350_v39 = vpop.xlane.xlu0 %349 }
 0x487   :  { %v351_v40 = vrot.slane %v350_v39, 4 }
 0x489   :  { %v352_v41 = vadd.f32 %v351_v40, %v350_v39 }
 0x48b   :  { %v353_v42 = vrot.slane %v352_v41, 2 }
 0x48d   :  { %v354_v43 = vadd.f32 %v353_v42, %v352_v41 }
 0x48f   :  { %v355_v44 = vrot.slane %v354_v43, 1 }
 0x491   :  { %v356_v45 = vadd.f32 %v355_v44, %v354_v43 }
 0x493   :  { %445 = vpush %v356_v45 }
 0x4c4   :  { %s446_s27 = spop %445 }
 0x4c5   :  { %359 = sst [smem:[#allocation2]] %s446_s27 }
 0x4c6   :  { %367 = dma.smem_to_hbm %s468_s22, 16, %s732_s5, [#allocation3]  }
 0x4c7   :  { %463 = dma.done.wait [#allocation3], 16  }
 0x4c8   :  { %464 = vsyncadd [#allocation3], 4294967280 }
 0x4c9   :  { %371 = sfence }
 0x4ca   :  { %372 = vsyncpa [#allocation3], 1 }

</bundles_post_ra>
